<compile_context>
chip_gen: v6e
topology: v6e:2x2x1
jax: 0.10.0
libtpu: 0.0.40
codegen_flags: <defaults>
</compile_context>

<pallas_src>
import math

import jax
import jax.numpy as jnp
from jax import lax
from jax.experimental import pallas as pl
from jax.experimental.pallas import tpu as pltpu

_INV_SQRT2 = 1.0 / math.sqrt(2.0)


def _round_up(x: int, m: int) -> int:
    return ((x + m - 1) // m) * m


def _sublane_multiple(dtype) -> int:
    itemsize = jnp.dtype(dtype).itemsize
    if itemsize >= 4:
        return 8
    if itemsize == 2:
        return 16
    return 32


def _gelu_exact_f32(h):
    # exact GELU (approximate='none'): 0.5 * x * (1 + erf(x / sqrt(2)))
    return 0.5 * h * (1.0 + lax.erf(h * _INV_SQRT2))


# ----------------------------- kernel bodies ------------------------------ #

def _kernel_1k_bias(x_ref, w_ref, b_ref, o_ref):
    # Single K tile: no accumulator, no pl.when.
    h = jnp.dot(x_ref[...], w_ref[...], preferred_element_type=jnp.float32)
    h = h + b_ref[...].astype(jnp.float32)
    o_ref[...] = _gelu_exact_f32(h).astype(o_ref.dtype)


def _kernel_1k_nobias(x_ref, w_ref, o_ref):
    h = jnp.dot(x_ref[...], w_ref[...], preferred_element_type=jnp.float32)
    o_ref[...] = _gelu_exact_f32(h).astype(o_ref.dtype)


def _kernel_mk_bias(x_ref, w_ref, b_ref, o_ref, acc_ref):
    k = pl.program_id(2)

    @pl.when(k == 0)
    def _init():
        # Fold bias into the accumulator init (the init write happens anyway).
        acc_ref[...] = jnp.broadcast_to(
            b_ref[...].astype(jnp.float32), acc_ref.shape)

    acc_ref[...] += jnp.dot(
        x_ref[...], w_ref[...], preferred_element_type=jnp.float32)

    @pl.when(k == pl.num_programs(2) - 1)
    def _finalize():
        o_ref[...] = _gelu_exact_f32(acc_ref[...]).astype(o_ref.dtype)


def _kernel_mk_nobias(x_ref, w_ref, o_ref, acc_ref):
    k = pl.program_id(2)

    @pl.when(k == 0)
    def _init():
        acc_ref[...] = jnp.zeros_like(acc_ref)

    acc_ref[...] += jnp.dot(
        x_ref[...], w_ref[...], preferred_element_type=jnp.float32)

    @pl.when(k == pl.num_programs(2) - 1)
    def _finalize():
        o_ref[...] = _gelu_exact_f32(acc_ref[...]).astype(o_ref.dtype)


# ----------------------------- host wrappers ------------------------------ #

def prepare_gelu_params(weight, bias=None):
    """One-time parameter prep (hoisted out of the per-call path).

    weight: (dim_in, dim_out); bias: (dim_out,) or None.
    Pads dim_out up to a multiple of 128 so output stores are lane-dense.
    """
    dim_in, dim_out = weight.shape
    dim_out_p = _round_up(dim_out, 128)
    if dim_out_p != dim_out:
        weight = jnp.pad(weight, ((0, 0), (0, dim_out_p - dim_out)))
        if bias is not None:
            bias = jnp.pad(bias, (0, dim_out_p - dim_out))
    bias2d = None if bias is None else bias.reshape(1, dim_out_p)
    return {"weight": weight, "bias2d": bias2d,
            "dim_in": dim_in, "dim_out": dim_out}


def gelu_proj_forward(x, params, *, tm=512, tn=512, tk=2048):
    """x: (..., dim_in) -> (..., dim_out) = gelu(x @ W + b), exact erf GELU."""
    weight = params["weight"]
    bias2d = params["bias2d"]
    dim_in = params["dim_in"]
    dim_out = params["dim_out"]
    dim_out_p = weight.shape[1]

    lead_shape = x.shape[:-1]
    M = math.prod(lead_shape) if lead_shape else 1
    x2d = x.reshape(M, dim_in)

    # Tile selection (layout rules: row tile multiple of sublane count or full M;
    # N / K tiles multiples of 128 or full extent).
    sub = _sublane_multiple(x.dtype)
    tm_eff = min(tm, _round_up(M, sub))
    tn_eff = min(tn, dim_out_p)

    tk = max(128, (tk // 128) * 128)
    single_k = dim_in <= tk
    if single_k:
        tk_eff = dim_in
        dim_in_p = dim_in
    else:
        tk_eff = tk
        # Correctness: Pallas does NOT zero-fill the OOB region of a partial K
        # block, so pad the reduction dim up to a multiple of tk_eff.
        dim_in_p = _round_up(dim_in, tk_eff)
        if dim_in_p != dim_in:
            x2d = jnp.pad(x2d, ((0, 0), (0, dim_in_p - dim_in)))
            weight = jnp.pad(weight, ((0, dim_in_p - dim_in), (0, 0)))

    # Give the second v7x TensorCore work on tiny-M shapes: ensure >= 2 tiles
    # along a parallel axis when possible.
    if (pl.cdiv(M, tm_eff) == 1 and pl.cdiv(dim_out_p, tn_eff) == 1
            and dim_out_p >= 256):
        tn_eff = _round_up(pl.cdiv(dim_out_p, 2), 128)

    # Explicit VMEM budget: double-buffered x/w/out tiles (+ bias) + f32 acc.
    isz = jnp.dtype(x.dtype).itemsize
    est = 2 * isz * (tm_eff * tk_eff + tk_eff * tn_eff
                     + tm_eff * tn_eff + tn_eff)
    if not single_k:
        est += 4 * tm_eff * tn_eff
    vmem_limit = int(min(max(2 * est, 32 * 2**20), 48 * 2**20))

    out_shape = jax.ShapeDtypeStruct((M, dim_out_p), x.dtype)

    if single_k:
        grid = (pl.cdiv(M, tm_eff), pl.cdiv(dim_out_p, tn_eff))
        x_spec = pl.BlockSpec((tm_eff, tk_eff), lambda i, j: (i, 0))
        w_spec = pl.BlockSpec((tk_eff, tn_eff), lambda i, j: (0, j))
        o_spec = pl.BlockSpec((tm_eff, tn_eff), lambda i, j: (i, j))
        if bias2d is not None:
            b_spec = pl.BlockSpec((1, tn_eff), lambda i, j: (0, j))
            kernel, in_specs, args = (
                _kernel_1k_bias, [x_spec, w_spec, b_spec], (x2d, weight, bias2d))
        else:
            kernel, in_specs, args = (
                _kernel_1k_nobias, [x_spec, w_spec], (x2d, weight))
        scratch = []
        dims = ("parallel", "parallel")
    else:
        grid = (pl.cdiv(M, tm_eff), pl.cdiv(dim_out_p, tn_eff),
                dim_in_p // tk_eff)
        x_spec = pl.BlockSpec((tm_eff, tk_eff), lambda i, j, k: (i, k))
        w_spec = pl.BlockSpec((tk_eff, tn_eff), lambda i, j, k: (k, j))
        o_spec = pl.BlockSpec((tm_eff, tn_eff), lambda i, j, k: (i, j))
        if bias2d is not None:
            b_spec = pl.BlockSpec((1, tn_eff), lambda i, j, k: (0, j))
            kernel, in_specs, args = (
                _kernel_mk_bias, [x_spec, w_spec, b_spec], (x2d, weight, bias2d))
        else:
            kernel, in_specs, args = (
                _kernel_mk_nobias, [x_spec, w_spec], (x2d, weight))
        scratch = [pltpu.VMEM((tm_eff, tn_eff), jnp.float32)]
        dims = ("parallel", "parallel", "arbitrary")

    out = pl.pallas_call(
        kernel,
        out_shape=out_shape,
        grid_spec=pltpu.PrefetchScalarGridSpec(
            num_scalar_prefetch=0,
            grid=grid,
            in_specs=in_specs,
            out_specs=o_spec,
            scratch_shapes=scratch,
        ),
        compiler_params=pltpu.CompilerParams(
            dimension_semantics=dims,
            vmem_limit_bytes=vmem_limit,
        ),
    )(*args)

    out = out[:, :dim_out]
    return out.reshape(*lead_shape, dim_out)


def gelu_module_forward(x, weight, bias=None, **tile_kw):
    """Convenience wrapper matching GELU.forward (prep + kernel in one call).

    For repeated calls, call prepare_gelu_params() once and reuse the result.
    """
    return gelu_proj_forward(x, prepare_gelu_params(weight, bias), **tile_kw)


# TODO(synk): optional fp8 weight quantization for v7x (per-channel scale folded
# into the epilogue) is not implemented -- it changes numerics vs. the module.


def _reference(x, weight, bias):
    h = jnp.einsum("...i,io->...o", x, weight,
                   precision=lax.Precision.HIGHEST)
    if bias is not None:
        h = h + bias
    return jax.nn.gelu(h, approximate=False).astype(x.dtype)


if __name__ == "__main__":
    key = jax.random.PRNGKey(0)
    batch, seq, dim_in, dim_out = 2, 8, 32, 64

    kx, kw, kb = jax.random.split(key, 3)
    x = jax.random.normal(kx, (batch, seq, dim_in), dtype=jnp.float32)
    # deterministic init (shapes match nn.Linear(dim_in, dim_out, bias=True),
    # weight stored as (dim_in, dim_out) = torch weight transposed once)
    bound = 1.0 / math.sqrt(dim_in)
    weight = jax.random.uniform(kw, (dim_in, dim_out), jnp.float32, -bound, bound)
    bias = jax.random.uniform(kb, (dim_out,), jnp.float32, -bound, bound)

    params = prepare_gelu_params(weight, bias)   # hoisted one-time prep
    out = gelu_proj_forward(x, params)
    out = jax.block_until_ready(out)

    ref = _reference(x, weight, bias)
    assert out.shape == (batch, seq, dim_out)
    assert jnp.allclose(out, ref, atol=1e-5, rtol=1e-5), "mismatch vs reference"

    print("KERNEL_OK")
</pallas_src>

<mosaic_0001>
module attributes {stable_mosaic.version = 11 : i64} {
  func.func @_kernel_1k_bias(%arg0: i32, %arg1: i32, %arg2: memref<16x32xf32, #tpu.memory_space<vmem>>, %arg3: memref<32x128xf32, #tpu.memory_space<vmem>>, %arg4: memref<1x128xf32, #tpu.memory_space<vmem>>, %arg5: memref<16x128xf32, #tpu.memory_space<vmem>>) attributes {dimension_semantics = [#tpu.dimension_semantics<parallel>, #tpu.dimension_semantics<parallel>], iteration_bounds = array<i64: 1, 1>, scalar_prefetch = 0 : i64, scratch_operands = 0 : i64, tpu.core_type = #tpu.core_type<tc>, window_params = [{transform_indices = @transform_0, window_bounds = array<i64: 16, 32>}, {transform_indices = @transform_1, window_bounds = array<i64: 32, 128>}, {transform_indices = @transform_2, window_bounds = array<i64: 1, 128>}, {transform_indices = @transform_3, window_bounds = array<i64: 16, 128>}]} {
    %c0 = arith.constant 0 : index
    %c0_0 = arith.constant 0 : index
    %0 = vector.load %arg2[%c0, %c0_0] : memref<16x32xf32, #tpu.memory_space<vmem>>, vector<16x32xf32>
    %c0_1 = arith.constant 0 : index
    %c0_2 = arith.constant 0 : index
    %1 = vector.load %arg3[%c0_1, %c0_2] : memref<32x128xf32, #tpu.memory_space<vmem>>, vector<32x128xf32>
    %cst = arith.constant dense<0.000000e+00> : vector<16x128xf32>
    %2 = tpu.matmul %0, %1, %cst {dimension_numbers = #tpu.dot_dimension_numbers<[1], [0], [0], [1], [0, 0, 1, 1], [], []>} : vector<16x32xf32>, vector<32x128xf32>, vector<16x128xf32> -> vector<16x128xf32>
    %c0_3 = arith.constant 0 : index
    %c0_4 = arith.constant 0 : index
    %3 = vector.load %arg4[%c0_3, %c0_4] : memref<1x128xf32, #tpu.memory_space<vmem>>, vector<1x128xf32>
    %4 = vector.broadcast %3 : vector<1x128xf32> to vector<16x128xf32>
    %5 = arith.addf %2, %4 : vector<16x128xf32>
    %cst_5 = arith.constant 5.000000e-01 : f32
    %6 = vector.broadcast %cst_5 : f32 to vector<16x128xf32>
    %7 = arith.mulf %6, %5 : vector<16x128xf32>
    %cst_6 = arith.constant 0.707106769 : f32
    %8 = vector.broadcast %cst_6 : f32 to vector<16x128xf32>
    %9 = arith.mulf %5, %8 : vector<16x128xf32>
    %10 = math.erf %9 : vector<16x128xf32>
    %cst_7 = arith.constant 1.000000e+00 : f32
    %11 = vector.broadcast %cst_7 : f32 to vector<16x128xf32>
    %12 = arith.addf %11, %10 : vector<16x128xf32>
    %13 = arith.mulf %7, %12 : vector<16x128xf32>
    %c0_8 = arith.constant 0 : index
    %c0_9 = arith.constant 0 : index
    %14 = vector.load %arg5[%c0_8, %c0_9] : memref<16x128xf32, #tpu.memory_space<vmem>>, vector<16x128xf32>
    tpu.vector_store %arg5[%c0_8, %c0_9], %13 {strides = array<i32>} : memref<16x128xf32, #tpu.memory_space<vmem>>, vector<16x128xf32>,
    return
  }
  func.func @transform_0(%arg0: i32, %arg1: i32) -> (i32, i32) {
    %c0_i32 = arith.constant 0 : i32
    %c0_i32_0 = arith.constant 0 : i32
    return %arg0, %c0_i32 : i32, i32
  }
  func.func @transform_1(%arg0: i32, %arg1: i32) -> (i32, i32) {
    %c0_i32 = arith.constant 0 : i32
    %c0_i32_0 = arith.constant 0 : i32
    return %c0_i32, %arg1 : i32, i32
  }
  func.func @transform_2(%arg0: i32, %arg1: i32) -> (i32, i32) {
    %c0_i32 = arith.constant 0 : i32
    %c0_i32_0 = arith.constant 0 : i32
    return %c0_i32, %arg1 : i32, i32
  }
  func.func @transform_3(%arg0: i32, %arg1: i32) -> (i32, i32) {
    %c0_i32 = arith.constant 0 : i32
    return %arg0, %arg1 : i32, i32
  }
}

</mosaic_0001>

<bundles_post_ra>
// kernel: tpu_custom_call.1
= control target key start
LH: loop header
LB: loop body
LE: loop exit
PB: predicated region body
PF: predicated region fallthrough
CT: control target
= control target key end

     0   :  { %8 = vsyncpa [#allocation3], 0  ;;  %s311_s0 = inlined_call_operand.hbm [shape: f32[16,32], index: 0, kind: input, shape index: {}]   ;;  %s312_s1 = inlined_call_operand.hbm [shape: f32[32,128], index: 1, kind: input, shape index: {}]   ;;  %s313_s2 = inlined_call_operand.vmem [shape: f32[1,128], index: 2, kind: input, shape index: {}]   ;;  %s314_s3 = inlined_call_operand.hbm [shape: f32[16,128], index: 3, kind: output, shape index: {}]  }
   0x1   :  { %9 = vsyncpa [#allocation6], 0 }
   0x2   :  { %10 = vsyncpa [#allocation4], 0  ;;  %s263_s12 = smov [#allocation2]  }
   0x3   :  { %s16_s13 = sshll.u32 %s263_s12, 4  ;;  %s17_s13 = int_to_ptr.vmem [resolvable:$true] %s16_s13 }
   0x4   :  { %s205_s14 = scalar_lea.vmem %s17_s13, 256  ;;  %p210_p1 = scmp.lt.s32.totalorder %s17_s13, %s17_s13 }
   0x5   :  { %p206_p0 = scmp.ne.s32.totalorder %s17_s13, %s205_s14  ;;  %p211_p2 = scmp.lt.s32.totalorder %s205_s14, %s205_s14 }
   0x7   :  { %p212_p3 = por %p211_p2, %p210_p1 }
   0x9   :  { %p213_p4 = pnand %p212_p3, %p206_p0 }
   0xb   :  { %216 = shalt.err (!%p213_p4)
}
   0xc   :  { %s264_s15 = smov 128   ;;  %s265_s16 = smov 8  }
   0xd   :  { %22 = dma.hbm_to_vmem [thread:$0]  %s311_s0, 256, %s17_s13, [#allocation3], %s264_s15, %s264_s15, %s265_s16  }
   0xe   :  { %s266_s19 = smov [#allocation5]  }
   0xf   :  { %s28_s20 = sshll.u32 %s266_s19, 4  ;;  %s29_s20 = int_to_ptr.vmem [resolvable:$true] %s28_s20 }
  0x10   :  { %s225_s21 = scalar_lea.vmem %s29_s20, 512  ;;  %p230_p6 = scmp.lt.s32.totalorder %s29_s20, %s29_s20 }
  0x11   :  { %p226_p5 = scmp.ne.s32.totalorder %s29_s20, %s225_s21  ;;  %p231_p7 = scmp.lt.s32.totalorder %s225_s21, %s225_s21 }
  0x13   :  { %p232_p8 = por %p231_p7, %p230_p6 }
  0x15   :  { %p233_p9 = pnand %p232_p8, %p226_p5 }
  0x17   :  { %236 = shalt.err (!%p233_p9)
}
  0x18   :  { %34 = dma.hbm_to_vmem [thread:$0]  %s312_s1, 512, %s29_s20, [#allocation6], %s264_s15, %s264_s15, %s265_s16  }
  0x19   :  { %257 = dma.done.wait [#allocation3], 256  }
  0x1a   :  { %258 = vsyncadd [#allocation3], 4294967040 }
  0x1b   :  { %259 = dma.done.wait [#allocation6], 512  }
  0x1c   :  { %260 = vsyncadd [#allocation6], 4294966784  ;;  %vm56_vm0 = vcmask 261120   ;;  %v48_v0 = vld [vmem:[#allocation5 + $0x18] sm:$0xff]  ;;  %v47_v1 = vld [vmem:[#allocation5 + $0x10] sm:$0xff]  ;;  %s267_s24 = smov [#allocation7]  }
  0x1d   :  { %177 = vmatprep.subr.mxu0 %v48_v0  ;;  %v43_v2 = vld [vmem:[#allocation2] sm:$0xff]  ;;  %v46_v3 = vld [vmem:[#allocation5 + $0x8] sm:$0xff]  ;;  %v45_v4 = vld [vmem:[#allocation5] sm:$0xff]  ;;  %s155_s25 = sshll.u32 %s267_s24, 4  ;;  %s156_s25 = int_to_ptr.vmem [resolvable:$true] %s155_s25 }
  0x1e   :  { %178 = vmatpush3.msra.mxu0 %v48_v0  ;;  %185 = vmatprep.mubr.msk.f32.mxu0 %vm56_vm0, %v43_v2  ;;  %v44_v5 = vld [vmem:[#allocation2 + $0x8] sm:$0xff]  ;;  %v168_v6 = vld [vmem:[%s313_s2] ss:$0 sm:$0xff]  ;;  %s237_s2 = scalar_lea.vmem %s156_s25, 256  ;;  %p242_p11 = scmp.lt.s32.totalorder %s156_s25, %s156_s25 }
  0x1f   :  { %179 = vmatprep.subr.mxu0 %v47_v1  ;;  %p238_p10 = scmp.ne.s32.totalorder %s156_s25, %s237_s2  ;;  %p243_p12 = scmp.lt.s32.totalorder %s237_s2, %s237_s2 }
  0x20   :  { %180 = vmatpush3.msra.mxu0 %v47_v1 }
  0x21   :  { %181 = vmatprep.subr.mxu0 %v46_v3  ;;  %p244_p13 = por %p243_p12, %p242_p11 }
  0x22   :  { %182 = vmatpush3.msra.mxu0 %v46_v3 }
  0x23   :  { %183 = vmatprep.subr.mxu0 %v45_v4  ;;  %p245_p0 = pnand %p244_p13, %p238_p10 }
  0x24   :  { %184 = vmatpush3.msra.mxu0 %v45_v4 }
  0x25   :  { %186 = vmatmul.mubr.msk.f32.vlgmr.msra.gmra.mxu0 %vm56_vm0, %v44_v5 }
  0xe5   :  { %v187_v7 = vpop.f32.mrf.mxu0 }
  0xe6   :  { %v135_v8 = vadd.f32 %v187_v7, %v168_v6 }
  0xe7   :  { %v129_v9 = vpop.f32.mrf.mxu0 }
  0xe8   :  { %v141_v10 = vmul.f32 0.70710677, %v135_v8  ;;  %v130_v11 = vadd.f32 %v168_v6, %v129_v9  ;;  %v139_v14 = vmul.f32 0.5, %v135_v8 }
  0xea   :  { %193 = verf.f32 %v141_v10  ;;  %v140_v12 = vmul.f32 0.70710677, %v130_v11  ;;  %v138_v18 = vmul.f32 0.5, %v130_v11 }
  0xec   :  { %195 = verf.f32 %v140_v12 }
  0xf7   :  { %v194_v13 = vpop.eup %193 }
  0xf8   :  { %v145_v15 = vadd.f32 1.0, %v194_v13 }
  0xf9   :  { %v196_v16 = vpop.eup %195 }
  0xfa   :  { %v147_v17 = vmul.f32 %v145_v15, %v139_v14  ;;  %v144_v19 = vadd.f32 1.0, %v196_v16 }
  0xfc   :  { %149 = vst [vmem:[#allocation7 + $0x8] sm:$0xff] %v147_v17  ;;  %v146_v20 = vmul.f32 %v144_v19, %v138_v18 }
  0xfe   :  { %148 = vst [vmem:[#allocation7] sm:$0xff] %v146_v20 }
  0xff   :  { %248 = shalt.err (!%p245_p0)
}
 0x100   :  { %161 = dma.vmem_to_hbm [thread:$0]  %s156_s25, 256, %s314_s3, [#allocation4], %s264_s15, %s264_s15, %s265_s16  }
 0x101   :  { %261 = dma.done.wait [#allocation4], 256  }
 0x102   :  { %262 = vsyncadd [#allocation4], 4294967040 }
 0x103   :  { %165 = vsyncpa [#allocation3], 1 }
 0x104   :  { %166 = vsyncpa [#allocation6], 1 }
 0x105   :  { %167 = vsyncpa [#allocation4], 1 }

</bundles_post_ra>
